<compile_context>
chip_gen: v6e
topology: v6e:2x2x1
jax: 0.10.0
libtpu: 0.0.40
codegen_flags: <defaults>
</compile_context>

<pallas_src>
import functools

import jax
import jax.numpy as jnp
from jax.experimental import pallas as pl
from jax.experimental.pallas import tpu as pltpu

NEG_SLOPE = 0.01     # F.leaky_relu default negative_slope
_LANE = 128
_SUBLANE = 8
_TM_MAX = 512        # max batch rows per grid step


def _round_up(n, m):
    return ((n + m - 1) // m) * m


def _leaky_relu(x):
    return jnp.where(x >= 0, x, NEG_SLOPE * x)


def _hash_bits(shape, seed_ref, salt):
    """Stateless counter-based uint32 hash (lowbias32-style finalizer).

    Pure VPU integer ops -> lowers under both Mosaic and the CPU interpreter
    (unlike pltpu.prng_seed / prng_random_bits).
    """
    n_cols = shape[-1]
    r = jax.lax.broadcasted_iota(jnp.int32, shape, 0).astype(jnp.uint32)
    c = jax.lax.broadcasted_iota(jnp.int32, shape, 1).astype(jnp.uint32)
    h = r * jnp.uint32(n_cols) + c
    mix = (seed_ref[0].astype(jnp.uint32) * jnp.uint32(0x9E3779B1)
           + jnp.uint32(salt) * jnp.uint32(0x85EBCA77)
           + pl.program_id(0).astype(jnp.uint32) * jnp.uint32(0xC2B2AE3D))
    h = h ^ mix
    h = h ^ (h >> 16)
    h = h * jnp.uint32(0x7FEB352D)
    h = h ^ (h >> 15)
    h = h * jnp.uint32(0x846CA68B)
    h = h ^ (h >> 16)
    return h


def _dropout(x, seed_ref, salt, p):
    """Inverted dropout; the 1/(1-p) scale is folded into the following
    layer's weights in the wrapper, so here we only zero dropped elements."""
    if p <= 0.0:
        return x
    thresh = jnp.uint32(min(int(p * (1 << 32)), (1 << 32) - 1))
    bits = _hash_bits(x.shape, seed_ref, salt)
    return jnp.where(bits >= thresh, x, 0.0)


def mlp_kernel(*refs, dropout_p, n_hidden):
    """refs = (seed, x, w_in, b_in, [w_h, b_h]*n_hidden, w_out, b_out, out)."""
    seed_ref = refs[0]
    x_ref = refs[1]
    w_in_ref, b_in_ref = refs[2], refs[3]
    hidden_refs = refs[4:4 + 2 * n_hidden]
    w_out_ref, b_out_ref = refs[4 + 2 * n_hidden], refs[5 + 2 * n_hidden]
    o_ref = refs[6 + 2 * n_hidden]

    # hidden = act(l_in(dropout(input)))
    h = _dropout(x_ref[...], seed_ref, 0, dropout_p)
    h = _leaky_relu(
        jnp.dot(h.astype(jnp.bfloat16), w_in_ref[...],
                preferred_element_type=jnp.float32) + b_in_ref[...])

    # for l_h in self.l_hs: hidden = act(l_h(dropout(hidden)))
    for li in range(n_hidden):
        w_ref = hidden_refs[2 * li]
        b_ref = hidden_refs[2 * li + 1]
        h = _dropout(h, seed_ref, li + 1, dropout_p)
        h = _leaky_relu(
            jnp.dot(h.astype(jnp.bfloat16), w_ref[...],
                    preferred_element_type=jnp.float32) + b_ref[...])

    # output = l_out(dropout(hidden))  -- lane-dense padded store
    h = _dropout(h, seed_ref, n_hidden + 1, dropout_p)
    o_ref[...] = (
        jnp.dot(h.astype(jnp.bfloat16), w_out_ref[...],
                preferred_element_type=jnp.float32) + b_out_ref[...]
    ).astype(o_ref.dtype)


def mlp_forward(x, params, seed, dropout_p):
    """params = (w_in, b_in, [(w_h, b_h), ...], w_out, b_out), torch layout."""
    w_in, b_in, hidden, w_out, b_out = params
    n_hidden = len(hidden)
    B, in_dim = x.shape
    hidden_dim = w_in.shape[0]
    out_dim = w_out.shape[0]

    in_pad = _round_up(in_dim, _LANE)
    hid_pad = _round_up(hidden_dim, _LANE)
    out_pad = _round_up(out_dim, _LANE)

    TM = min(_TM_MAX, _round_up(B, _SUBLANE))
    B_pad = _round_up(B, TM)
    n_tiles = B_pad // TM

    # Fold the inverted-dropout 1/(1-p) scale into the weights (each Linear is
    # preceded by a dropout in this module), so the kernel skips the multiply.
    inv_keep = 1.0 / (1.0 - float(dropout_p)) if dropout_p > 0.0 else 1.0

    def prep_w(w, rows_pad, cols_pad):
        wt = (w.T.astype(jnp.float32)) * inv_keep      # (in_f, out_f)
        wt = jnp.pad(wt, ((0, rows_pad - wt.shape[0]), (0, cols_pad - wt.shape[1])))
        return wt.astype(jnp.bfloat16)

    def prep_b(b, cols_pad):
        bb = b.reshape(1, -1).astype(jnp.float32)
        return jnp.pad(bb, ((0, 0), (0, cols_pad - bb.shape[1])))

    weight_args = [prep_w(w_in, in_pad, hid_pad), prep_b(b_in, hid_pad)]
    for (w_h, b_h) in hidden:
        weight_args += [prep_w(w_h, hid_pad, hid_pad), prep_b(b_h, hid_pad)]
    weight_args += [prep_w(w_out, hid_pad, out_pad), prep_b(b_out, out_pad)]

    x_pad = jnp.pad(x.astype(jnp.float32),
                    ((0, B_pad - B), (0, in_pad - in_dim)))
    seed_arr = jnp.asarray([seed], dtype=jnp.int32)

    kernel = functools.partial(mlp_kernel, dropout_p=float(dropout_p),
                               n_hidden=n_hidden)

    tile_map = lambda i, seed_ref: (i, 0)     # batch-tiled arrays
    const_map = lambda i, seed_ref: (0, 0)    # weights/biases stay resident

    in_specs = [pl.BlockSpec((TM, in_pad), tile_map)]
    in_specs += [pl.BlockSpec(a.shape, const_map) for a in weight_args]
    out_specs = pl.BlockSpec((TM, out_pad), tile_map)

    # Advisory cost + VMEM budget (clamped to v7x's 64 MiB physical VMEM).
    flops = 2 * B_pad * (in_pad * hid_pad
                         + n_hidden * hid_pad * hid_pad
                         + hid_pad * out_pad)
    weight_bytes = sum(int(a.size) * a.dtype.itemsize for a in weight_args)
    bytes_accessed = int(x_pad.size * 4 + weight_bytes + B_pad * out_pad * 4)
    tile_bytes = 2 * 2 * (TM * in_pad + TM * out_pad) * 4   # double-buffered x/out
    act_bytes = 4 * TM * max(in_pad, hid_pad, out_pad) * 4  # live activations
    vmem_need = weight_bytes + tile_bytes + act_bytes + (4 << 20)
    vmem_limit = int(min(64 * 2**20, max(32 * 2**20, vmem_need)))

    out = pl.pallas_call(
        kernel,
        out_shape=jax.ShapeDtypeStruct((B_pad, out_pad), jnp.float32),
        grid_spec=pltpu.PrefetchScalarGridSpec(
            num_scalar_prefetch=1,
            grid=(n_tiles,),
            in_specs=in_specs,
            out_specs=out_specs,
        ),
        compiler_params=pltpu.CompilerParams(
            dimension_semantics=("parallel",),
            vmem_limit_bytes=vmem_limit,
        ),
        cost_estimate=pl.CostEstimate(flops=flops, transcendentals=0,
                                      bytes_accessed=bytes_accessed),
    )(seed_arr, x_pad, *weight_args)

    return out[:B, :out_dim]


def init_mlp_params(key, in_dim, out_dim, hidden_dim, n_layers):
    """Deterministic synthetic parameters in torch nn.Linear layout (out_f, in_f)."""
    keys = jax.random.split(key, 2 * n_layers)

    def lin(kw, kb, fan_in, fan_out):
        bound = 1.0 / jnp.sqrt(jnp.float32(fan_in))
        w = jax.random.uniform(kw, (fan_out, fan_in), jnp.float32, -bound, bound)
        b = jax.random.uniform(kb, (fan_out,), jnp.float32, -bound, bound)
        return w, b

    w_in, b_in = lin(keys[0], keys[1], in_dim, hidden_dim)
    hidden = []
    for i in range(n_layers - 2):
        w_h, b_h = lin(keys[2 + 2 * i], keys[3 + 2 * i], hidden_dim, hidden_dim)
        hidden.append((w_h, b_h))
    w_out, b_out = lin(keys[-2], keys[-1], hidden_dim, out_dim)
    return (w_in, b_in, hidden, w_out, b_out)


def mlp_reference_no_dropout(x, params):
    """Pure-JAX reference (eval mode) emulating the kernel's bf16 matmul inputs."""
    w_in, b_in, hidden, w_out, b_out = params

    def mm(h, w):
        hb = h.astype(jnp.bfloat16).astype(jnp.float32)
        wb = w.T.astype(jnp.bfloat16).astype(jnp.float32)
        return hb @ wb

    h = _leaky_relu(mm(x, w_in) + b_in)
    for (w_h, b_h) in hidden:
        h = _leaky_relu(mm(h, w_h) + b_h)
    return mm(h, w_out) + b_out


if __name__ == "__main__":
    batch, in_dim, hidden_dim, out_dim = 8, 16, 32, 4
    n_layers = 3          # l_in + 1 hidden + l_out
    dropout_p = 0.1

    key = jax.random.PRNGKey(0)
    kx, kp = jax.random.split(key)
    x = jax.random.normal(kx, (batch, in_dim), dtype=jnp.float32)
    params = init_mlp_params(kp, in_dim, out_dim, hidden_dim, n_layers)

    # 1) Correctness check vs pure-JAX reference with dropout disabled (eval mode).
    out_eval = jax.block_until_ready(mlp_forward(x, params, seed=0, dropout_p=0.0))
    ref_eval = mlp_reference_no_dropout(x, params)
    assert out_eval.shape == (batch, out_dim)
    assert jnp.allclose(out_eval, ref_eval, atol=1e-2, rtol=1e-2), "mismatch vs reference"

    # 2) Training-mode forward with in-kernel dropout (stochastic, deterministic seed).
    out_train = jax.block_until_ready(mlp_forward(x, params, seed=42, dropout_p=dropout_p))
    assert out_train.shape == (batch, out_dim)
    assert bool(jnp.all(jnp.isfinite(out_train)))
    # dropout should actually perturb the output
    assert not bool(jnp.allclose(out_train, out_eval, atol=1e-6))

    # TODO(synk): dropout mask stream is a counter-based hash, deterministic per
    # (seed, layer, tile) but not bit-identical to torch.nn.Dropout's RNG.
    print("KERNEL_OK")
</pallas_src>

<mosaic_0001>
module attributes {stable_mosaic.version = 11 : i64} {
  func.func @mlp_kernel(%arg0: i32, %arg1: memref<1xi32, #tpu.memory_space<smem>>, %arg2: memref<8x128xf32, #tpu.memory_space<vmem>>, %arg3: memref<128x128xbf16, #tpu.memory_space<vmem>>, %arg4: memref<1x128xf32, #tpu.memory_space<vmem>>, %arg5: memref<128x128xbf16, #tpu.memory_space<vmem>>, %arg6: memref<1x128xf32, #tpu.memory_space<vmem>>, %arg7: memref<128x128xbf16, #tpu.memory_space<vmem>>, %arg8: memref<1x128xf32, #tpu.memory_space<vmem>>, %arg9: memref<8x128xf32, #tpu.memory_space<vmem>>) attributes {dimension_semantics = [#tpu.dimension_semantics<parallel>], iteration_bounds = array<i64: 1>, scalar_prefetch = 1 : i64, scratch_operands = 0 : i64, tpu.core_type = #tpu.core_type<tc>, window_params = [{transform_indices = @transform_0, window_bounds = array<i64: 8, 128>}, {pipeline_mode = #tpu.pipeline_mode<synchronous>, transform_indices = @transform_1, window_bounds = array<i64: 128, 128>}, {pipeline_mode = #tpu.pipeline_mode<synchronous>, transform_indices = @transform_2, window_bounds = array<i64: 1, 128>}, {pipeline_mode = #tpu.pipeline_mode<synchronous>, transform_indices = @transform_3, window_bounds = array<i64: 128, 128>}, {pipeline_mode = #tpu.pipeline_mode<synchronous>, transform_indices = @transform_4, window_bounds = array<i64: 1, 128>}, {pipeline_mode = #tpu.pipeline_mode<synchronous>, transform_indices = @transform_5, window_bounds = array<i64: 128, 128>}, {pipeline_mode = #tpu.pipeline_mode<synchronous>, transform_indices = @transform_6, window_bounds = array<i64: 1, 128>}, {transform_indices = @transform_7, window_bounds = array<i64: 8, 128>}]} {
    %c0 = arith.constant 0 : index
    %c0_0 = arith.constant 0 : index
    %0 = vector.load %arg2[%c0, %c0_0] : memref<8x128xf32, #tpu.memory_space<vmem>>, vector<8x128xf32>
    %1 = arith.truncf %0 : vector<8x128xf32> to vector<8x128xbf16>
    %c0_1 = arith.constant 0 : index
    %c0_2 = arith.constant 0 : index
    %2 = vector.load %arg3[%c0_1, %c0_2] : memref<128x128xbf16, #tpu.memory_space<vmem>>, vector<128x128xbf16>
    %cst = arith.constant dense<0.000000e+00> : vector<8x128xf32>
    %3 = tpu.matmul %1, %2, %cst {dimension_numbers = #tpu.dot_dimension_numbers<[1], [0], [0], [1], [0, 0, 1, 1], [], []>} : vector<8x128xbf16>, vector<128x128xbf16>, vector<8x128xf32> -> vector<8x128xf32>
    %c0_3 = arith.constant 0 : index
    %c0_4 = arith.constant 0 : index
    %4 = vector.load %arg4[%c0_3, %c0_4] : memref<1x128xf32, #tpu.memory_space<vmem>>, vector<1x128xf32>
    %5 = vector.broadcast %4 : vector<1x128xf32> to vector<8x128xf32>
    %6 = arith.addf %3, %5 : vector<8x128xf32>
    %cst_5 = arith.constant 0.000000e+00 : f32
    %7 = vector.broadcast %cst_5 : f32 to vector<8x128xf32>
    %8 = arith.cmpf oge, %6, %7 : vector<8x128xf32>
    %cst_6 = arith.constant 0.00999999977 : f32
    %9 = vector.broadcast %cst_6 : f32 to vector<8x128xf32>
    %10 = arith.mulf %9, %6 : vector<8x128xf32>
    %11 = arith.select %8, %6, %10 : vector<8x128xi1>, vector<8x128xf32>
    %12 = arith.truncf %11 : vector<8x128xf32> to vector<8x128xbf16>
    %c0_7 = arith.constant 0 : index
    %c0_8 = arith.constant 0 : index
    %13 = vector.load %arg5[%c0_7, %c0_8] : memref<128x128xbf16, #tpu.memory_space<vmem>>, vector<128x128xbf16>
    %cst_9 = arith.constant dense<0.000000e+00> : vector<8x128xf32>
    %14 = tpu.matmul %12, %13, %cst_9 {dimension_numbers = #tpu.dot_dimension_numbers<[1], [0], [0], [1], [0, 0, 1, 1], [], []>} : vector<8x128xbf16>, vector<128x128xbf16>, vector<8x128xf32> -> vector<8x128xf32>
    %c0_10 = arith.constant 0 : index
    %c0_11 = arith.constant 0 : index
    %15 = vector.load %arg6[%c0_10, %c0_11] : memref<1x128xf32, #tpu.memory_space<vmem>>, vector<1x128xf32>
    %16 = vector.broadcast %15 : vector<1x128xf32> to vector<8x128xf32>
    %17 = arith.addf %14, %16 : vector<8x128xf32>
    %cst_12 = arith.constant 0.000000e+00 : f32
    %18 = vector.broadcast %cst_12 : f32 to vector<8x128xf32>
    %19 = arith.cmpf oge, %17, %18 : vector<8x128xf32>
    %cst_13 = arith.constant 0.00999999977 : f32
    %20 = vector.broadcast %cst_13 : f32 to vector<8x128xf32>
    %21 = arith.mulf %20, %17 : vector<8x128xf32>
    %22 = arith.select %19, %17, %21 : vector<8x128xi1>, vector<8x128xf32>
    %23 = arith.truncf %22 : vector<8x128xf32> to vector<8x128xbf16>
    %c0_14 = arith.constant 0 : index
    %c0_15 = arith.constant 0 : index
    %24 = vector.load %arg7[%c0_14, %c0_15] : memref<128x128xbf16, #tpu.memory_space<vmem>>, vector<128x128xbf16>
    %cst_16 = arith.constant dense<0.000000e+00> : vector<8x128xf32>
    %25 = tpu.matmul %23, %24, %cst_16 {dimension_numbers = #tpu.dot_dimension_numbers<[1], [0], [0], [1], [0, 0, 1, 1], [], []>} : vector<8x128xbf16>, vector<128x128xbf16>, vector<8x128xf32> -> vector<8x128xf32>
    %c0_17 = arith.constant 0 : index
    %c0_18 = arith.constant 0 : index
    %26 = vector.load %arg8[%c0_17, %c0_18] : memref<1x128xf32, #tpu.memory_space<vmem>>, vector<1x128xf32>
    %27 = vector.broadcast %26 : vector<1x128xf32> to vector<8x128xf32>
    %28 = arith.addf %25, %27 : vector<8x128xf32>
    %c0_19 = arith.constant 0 : index
    %c0_20 = arith.constant 0 : index
    %29 = vector.load %arg9[%c0_19, %c0_20] : memref<8x128xf32, #tpu.memory_space<vmem>>, vector<8x128xf32>
    tpu.vector_store %arg9[%c0_19, %c0_20], %28 {strides = array<i32>} : memref<8x128xf32, #tpu.memory_space<vmem>>, vector<8x128xf32>,
    return
  }
  func.func @transform_0(%arg0: i32, %arg1: memref<1xi32, #tpu.memory_space<smem>>) -> (i32, i32) {
    %c0_i32 = arith.constant 0 : i32
    %c0_i32_0 = arith.constant 0 : i32
    return %arg0, %c0_i32 : i32, i32
  }
  func.func @transform_1(%arg0: i32, %arg1: memref<1xi32, #tpu.memory_space<smem>>) -> (i32, i32) {
    %c0_i32 = arith.constant 0 : i32
    %c0_i32_0 = arith.constant 0 : i32
    %c0_i32_1 = arith.constant 0 : i32
    return %c0_i32, %c0_i32_0 : i32, i32
  }
  func.func @transform_2(%arg0: i32, %arg1: memref<1xi32, #tpu.memory_space<smem>>) -> (i32, i32) {
    %c0_i32 = arith.constant 0 : i32
    %c0_i32_0 = arith.constant 0 : i32
    %c0_i32_1 = arith.constant 0 : i32
    return %c0_i32, %c0_i32_0 : i32, i32
  }
  func.func @transform_3(%arg0: i32, %arg1: memref<1xi32, #tpu.memory_space<smem>>) -> (i32, i32) {
    %c0_i32 = arith.constant 0 : i32
    %c0_i32_0 = arith.constant 0 : i32
    %c0_i32_1 = arith.constant 0 : i32
    return %c0_i32, %c0_i32_0 : i32, i32
  }
  func.func @transform_4(%arg0: i32, %arg1: memref<1xi32, #tpu.memory_space<smem>>) -> (i32, i32) {
    %c0_i32 = arith.constant 0 : i32
    %c0_i32_0 = arith.constant 0 : i32
    %c0_i32_1 = arith.constant 0 : i32
    return %c0_i32, %c0_i32_0 : i32, i32
  }
  func.func @transform_5(%arg0: i32, %arg1: memref<1xi32, #tpu.memory_space<smem>>) -> (i32, i32) {
    %c0_i32 = arith.constant 0 : i32
    %c0_i32_0 = arith.constant 0 : i32
    %c0_i32_1 = arith.constant 0 : i32
    return %c0_i32, %c0_i32_0 : i32, i32
  }
  func.func @transform_6(%arg0: i32, %arg1: memref<1xi32, #tpu.memory_space<smem>>) -> (i32, i32) {
    %c0_i32 = arith.constant 0 : i32
    %c0_i32_0 = arith.constant 0 : i32
    %c0_i32_1 = arith.constant 0 : i32
    return %c0_i32, %c0_i32_0 : i32, i32
  }
  func.func @transform_7(%arg0: i32, %arg1: memref<1xi32, #tpu.memory_space<smem>>) -> (i32, i32) {
    %c0_i32 = arith.constant 0 : i32
    %c0_i32_0 = arith.constant 0 : i32
    return %arg0, %c0_i32 : i32, i32
  }
}

</mosaic_0001>

<bundles_post_ra>
// kernel: tpu_custom_call.1
= control target key start
LH: loop header
LB: loop body
LE: loop exit
PB: predicated region body
PF: predicated region fallthrough
CT: control target
= control target key end

     0   :  { %14 = vsyncpa [#allocation5], 0  ;;  %s816_s0 = inlined_call_operand.<no memory space> [shape: s32[1], index: 0, kind: input, shape index: {}]   ;;  %s817_s1 = inlined_call_operand.hbm [shape: f32[8,128], index: 1, kind: input, shape index: {}]   ;;  %s818_s2 = inlined_call_operand.hbm [shape: bf16[128,128], index: 2, kind: input, shape index: {}]   ;;  %s819_s3 = inlined_call_operand.vmem [shape: f32[1,128], index: 3, kind: input, shape index: {}]   ;;  %s820_s4 = inlined_call_operand.hbm [shape: bf16[128,128], index: 4, kind: input, shape index: {}]   ;;  %s821_s5 = inlined_call_operand.vmem [shape: f32[1,128], index: 5, kind: input, shape index: {}]   ;;  %s822_s6 = inlined_call_operand.hbm [shape: bf16[128,128], index: 6, kind: input, shape index: {}]   ;;  %s823_s7 = inlined_call_operand.vmem [shape: f32[1,128], index: 7, kind: input, shape index: {}]   ;;  %s824_s8 = inlined_call_operand.hbm [shape: f32[8,128], index: 8, kind: output, shape index: {}]  }
   0x1   :  { %15 = vsyncpa [#allocation8], 0 }
   0x2   :  { %16 = vsyncpa [#allocation11], 0 }
   0x3   :  { %17 = vsyncpa [#allocation6], 0  ;;  %s699_s26 = smov [#allocation7]  }
   0x4   :  { %s33_s27 = sshll.u32 %s699_s26, 4  ;;  %s34_s27 = int_to_ptr.vmem [resolvable:$true] %s33_s27 }
   0x5   :  { %s599_s28 = scalar_lea.vmem %s34_s27, 1024  ;;  %p604_p1 = scmp.lt.s32.totalorder %s34_s27, %s34_s27 }
   0x6   :  { %p600_p0 = scmp.ne.s32.totalorder %s34_s27, %s599_s28  ;;  %p605_p2 = scmp.lt.s32.totalorder %s599_s28, %s599_s28 }
   0x8   :  { %p606_p3 = por %p605_p2, %p604_p1 }
   0xa   :  { %p607_p4 = pnand %p606_p3, %p600_p0 }
   0xc   :  { %610 = shalt.err (!%p607_p4)
}
   0xd   :  { %s700_s29 = smov 64   ;;  %s701_s30 = smov 4  }
   0xe   :  { %39 = dma.hbm_to_vmem [thread:$0]  %s818_s2, 1024, %s34_s27, [#allocation8], %s700_s29, %s700_s29, %s701_s30  }
   0xf   :  { %s702_s11 = smov [#allocation4]   ;;  %s703_s13 = smov [#allocation9]  }
  0x10   :  { %s24_s12 = sshll.u32 %s702_s11, 4  ;;  %s47_s14 = sshll.u32 %s703_s13, 4  ;;  %s25_s12 = int_to_ptr.vmem [resolvable:$true] %s24_s12  ;;  %s48_s14 = int_to_ptr.vmem [resolvable:$true] %s47_s14 }
  0x11   :  { %s619_s15 = scalar_lea.vmem %s25_s12, 128  ;;  %p624_p6 = scmp.lt.s32.totalorder %s25_s12, %s25_s12 }
  0x12   :  { %p620_p5 = scmp.ne.s32.totalorder %s25_s12, %s619_s15  ;;  %p625_p7 = scmp.lt.s32.totalorder %s619_s15, %s619_s15 }
  0x14   :  { %p626_p8 = por %p625_p7, %p624_p6 }
  0x16   :  { %p627_p9 = pnand %p626_p8, %p620_p5 }
  0x18   :  { %630 = shalt.err (!%p627_p9)
}
  0x19   :  { %27 = dma.hbm_to_vmem [thread:$0]  %s817_s1, 128, %s25_s12, [#allocation5]  }
  0x1a   :  { %s639_s18 = scalar_lea.vmem %s48_s14, 1024  ;;  %p644_p11 = scmp.lt.s32.totalorder %s48_s14, %s48_s14 }
  0x1b   :  { %p640_p10 = scmp.ne.s32.totalorder %s48_s14, %s639_s18  ;;  %p645_p12 = scmp.lt.s32.totalorder %s639_s18, %s639_s18 }
  0x1d   :  { %p646_p13 = por %p645_p12, %p644_p11 }
  0x1f   :  { %p647_p0 = pnand %p646_p13, %p640_p10 }
  0x21   :  { %650 = shalt.err (!%p647_p0)
}
  0x22   :  { %53 = dma.hbm_to_vmem [thread:$0]  %s820_s4, 1024, %s48_s14, [#allocation8], %s700_s29, %s700_s29, %s701_s30  }
  0x23   :  { %s704_s20 = smov [#allocation10]  }
  0x24   :  { %s61_s21 = sshll.u32 %s704_s20, 4  ;;  %s62_s21 = int_to_ptr.vmem [resolvable:$true] %s61_s21 }
  0x25   :  { %s659_s22 = scalar_lea.vmem %s62_s21, 1024  ;;  %p664_p2 = scmp.lt.s32.totalorder %s62_s21, %s62_s21 }
  0x26   :  { %p660_p1 = scmp.ne.s32.totalorder %s62_s21, %s659_s22  ;;  %p665_p3 = scmp.lt.s32.totalorder %s659_s22, %s659_s22 }
  0x28   :  { %p666_p4 = por %p665_p3, %p664_p2 }
  0x2a   :  { %p667_p5 = pnand %p666_p4, %p660_p1 }
  0x2c   :  { %670 = shalt.err (!%p667_p5)
}
  0x2d   :  { %67 = dma.hbm_to_vmem [thread:$0]  %s822_s6, 1024, %s62_s21, [#allocation11], %s700_s29, %s700_s29, %s701_s30  }
  0x2e   :  { %691 = dma.done.wait [#allocation5], 128  }
  0x2f   :  { %692 = vsyncadd [#allocation5], 4294967168 }
  0x30   :  { %693 = dma.done.wait [#allocation8], 2048  }
  0x31   :  { %694 = vsyncadd [#allocation8], 4294965248 }
  0x32   :  { %695 = dma.done.wait [#allocation11], 1024  }
  0x33   :  { %696 = vsyncadd [#allocation11], 4294966272  ;;  %v705_v0 = vmov 0.0   ;;  %vm706_vm0 = vmmov 0   ;;  %v567_v1 = vld [vmem:[#allocation7 + $0x38] sm:$0xff]   ;;  %v568_v2 = vld [vmem:[#allocation7 + $0x30] sm:$0xff]  }
  0x34   :  { %498 = vmatprep.subr.bf16.mxu0 %v705_v0  ;;  %514 = vmatprep.mubr.msk.bf16.mxu0 %vm706_vm0, %v705_v0  ;;  %v569_v3 = vld [vmem:[#allocation7 + $0x28] sm:$0xff]   ;;  %v575_v4 = vld [vmem:[#allocation9 + $0x38] sm:$0xff]   ;;  %v570_v5 = vld [vmem:[#allocation7 + $0x20] sm:$0xff]   ;;  %s707_s26 = smov [#allocation12]  }
  0x35   :  { %518 = vmatprep.subr.bf16.mxu1 %v705_v0  ;;  %534 = vmatprep.mubr.msk.bf16.mxu1 %vm706_vm0, %v705_v0  ;;  %v576_v6 = vld [vmem:[#allocation9 + $0x30] sm:$0xff]   ;;  %v571_v7 = vld [vmem:[#allocation7 + $0x18] sm:$0xff]   ;;  %v577_v8 = vld [vmem:[#allocation9 + $0x28] sm:$0xff]   ;;  %s433_s27 = sshll.u32 %s707_s26, 4  ;;  %s434_s27 = int_to_ptr.vmem [resolvable:$true] %s433_s27 }
  0x36   :  { %499 = vmatpush3.bf16.msra.mxu0 %v567_v1  ;;  %519 = vmatpush3.bf16.msra.mxu1 %v575_v4  ;;  %v572_v9 = vld [vmem:[#allocation7 + $0x10] sm:$0xff]   ;;  %v578_v10 = vld [vmem:[#allocation9 + $0x20] sm:$0xff]   ;;  %v573_v11 = vld [vmem:[#allocation7 + $0x8] sm:$0xff]   ;;  %p676_p7 = scmp.lt.s32.totalorder %s434_s27, %s434_s27 }
  0x37   :  { %500 = vmatprep.subr.bf16.mxu0 %v705_v0  ;;  %520 = vmatprep.subr.bf16.mxu1 %v705_v0  ;;  %v579_v12 = vld [vmem:[#allocation9 + $0x18] sm:$0xff]   ;;  %v574_v13 = vld [vmem:[#allocation7] sm:$0xff]   ;;  %v580_v15 = vld [vmem:[#allocation9 + $0x10] sm:$0xff]  }
  0x38   :  { %v83_v14 = vld [vmem:[#allocation4] sm:$0xff]  ;;  %v581_v17 = vld [vmem:[#allocation9 + $0x8] sm:$0xff]   ;;  %v582_v18 = vld [vmem:[#allocation9] sm:$0xff]  }
  0x39   :  { %v84_v16 = vpack.c.bf16 %v83_v14, %v83_v14  ;;  %v583_v19 = vld [vmem:[#allocation10 + $0x38] sm:$0xff]   ;;  %v584_v20 = vld [vmem:[#allocation10 + $0x30] sm:$0xff]   ;;  %v585_v21 = vld [vmem:[#allocation10 + $0x28] sm:$0xff]  }
  0x3a   :  { %501 = vmatpush3.bf16.msra.mxu0 %v568_v2  ;;  %521 = vmatpush3.bf16.msra.mxu1 %v576_v6  ;;  %v586_v22 = vld [vmem:[#allocation10 + $0x20] sm:$0xff]   ;;  %v587_v23 = vld [vmem:[#allocation10 + $0x18] sm:$0xff]   ;;  %v588_v24 = vld [vmem:[#allocation10 + $0x10] sm:$0xff]  }
  0x3b   :  { %502 = vmatprep.subr.bf16.mxu0 %v705_v0  ;;  %522 = vmatprep.subr.bf16.mxu1 %v705_v0  ;;  %v444_v25 = vld [vmem:[%s819_s3] ss:$0 sm:$0xff]  ;;  %v589_v34 = vld [vmem:[#allocation10 + $0x8] sm:$0xff]   ;;  %v590_v35 = vld [vmem:[#allocation10] sm:$0xff]  }
  0x3c   :  { %v453_v36 = vld [vmem:[%s821_s5] ss:$0 sm:$0xff]  ;;  %s671_s5 = scalar_lea.vmem %s434_s27, 128 }
  0x3d   :  { %v462_v45 = vld [vmem:[%s823_s7] ss:$0 sm:$0xff]  ;;  %p672_p6 = scmp.ne.s32.totalorder %s434_s27, %s671_s5  ;;  %p677_p8 = scmp.lt.s32.totalorder %s671_s5, %s671_s5 }
  0x3e   :  { %503 = vmatpush3.bf16.msra.mxu0 %v569_v3  ;;  %523 = vmatpush3.bf16.msra.mxu1 %v577_v8 }
  0x3f   :  { %504 = vmatprep.subr.bf16.mxu0 %v705_v0  ;;  %524 = vmatprep.subr.bf16.mxu1 %v705_v0  ;;  %p678_p9 = por %p677_p8, %p676_p7 }
  0x41   :  { %p679_p10 = pnand %p678_p9, %p672_p6 }
  0x42   :  { %505 = vmatpush3.bf16.msra.mxu0 %v570_v5  ;;  %525 = vmatpush3.bf16.msra.mxu1 %v578_v10 }
  0x43   :  { %506 = vmatprep.subr.bf16.mxu0 %v705_v0  ;;  %526 = vmatprep.subr.bf16.mxu1 %v705_v0 }
  0x46   :  { %507 = vmatpush3.bf16.msra.mxu0 %v571_v7  ;;  %527 = vmatpush3.bf16.msra.mxu1 %v579_v12 }
  0x47   :  { %508 = vmatprep.subr.bf16.mxu0 %v705_v0  ;;  %528 = vmatprep.subr.bf16.mxu1 %v705_v0 }
  0x4a   :  { %509 = vmatpush3.bf16.msra.mxu0 %v572_v9  ;;  %529 = vmatpush3.bf16.msra.mxu1 %v580_v15 }
  0x4b   :  { %510 = vmatprep.subr.bf16.mxu0 %v705_v0  ;;  %530 = vmatprep.subr.bf16.mxu1 %v705_v0 }
  0x4e   :  { %511 = vmatpush3.bf16.msra.mxu0 %v573_v11  ;;  %531 = vmatpush3.bf16.msra.mxu1 %v581_v17 }
  0x4f   :  { %512 = vmatprep.subr.bf16.mxu0 %v705_v0  ;;  %532 = vmatprep.subr.bf16.mxu1 %v705_v0 }
  0x52   :  { %513 = vmatpush3.bf16.msra.mxu0 %v574_v13  ;;  %533 = vmatpush3.bf16.msra.mxu1 %v582_v18 }
  0x53   :  { %538 = vmatprep.subr.bf16.mxu0 %v705_v0 }
  0x55   :  { %515 = vmatmul.mubr.bf16.vlgmr.msra.gmra.mxu0 %v84_v16 }
  0x56   :  { %554 = vmatprep.mubr.msk.bf16.mxu0 %vm706_vm0, %v705_v0  ;;  %539 = vmatpush3.bf16.msra.mxu0 %v583_v19 }
  0x57   :  { %540 = vmatprep.subr.bf16.mxu0 %v705_v0 }
  0x5a   :  { %541 = vmatpush3.bf16.msra.mxu0 %v584_v20 }
  0x5b   :  { %542 = vmatprep.subr.bf16.mxu0 %v705_v0 }
  0x5e   :  { %543 = vmatpush3.bf16.msra.mxu0 %v585_v21 }
  0x5f   :  { %544 = vmatprep.subr.bf16.mxu0 %v705_v0 }
  0x62   :  { %545 = vmatpush3.bf16.msra.mxu0 %v586_v22 }
  0x63   :  { %546 = vmatprep.subr.bf16.mxu0 %v705_v0 }
  0x66   :  { %547 = vmatpush3.bf16.msra.mxu0 %v587_v23 }
  0x67   :  { %548 = vmatprep.subr.bf16.mxu0 %v705_v0 }
  0x6a   :  { %549 = vmatpush3.bf16.msra.mxu0 %v588_v24 }
  0x6b   :  { %550 = vmatprep.subr.bf16.mxu0 %v705_v0 }
  0x6e   :  { %551 = vmatpush3.bf16.msra.mxu0 %v589_v34 }
  0x6f   :  { %552 = vmatprep.subr.bf16.mxu0 %v705_v0 }
  0x72   :  { %553 = vmatpush3.bf16.msra.mxu0 %v590_v35 }
 0x115   :  { %v190_v26 = vpop.f32.mrf.mxu0 }
 0x116   :  { %v191_v27 = vadd.f32 %v444_v25, %v190_v26 }
 0x117   :  { %v516_v28 = vpop.f32.mrf.mxu0 }
 0x118   :  { %vm196_vm1 = vcmp.ge.f32.partialorder %v191_v27, 0.0  ;;  %v197_v29 = vmul.f32 0.01, %v191_v27 }
 0x119   :  { %v193_v30 = vpop.f32.mrf.mxu0 }
 0x11a   :  { %v198_v31 = vsel %vm196_vm1, %v191_v27, %v197_v29 }
 0x11b   :  { %v517_v32 = vpop.f32.mrf.mxu0  ;;  %v199_v33 = vpack.c.bf16 %v198_v31, %v198_v31 }
 0x11d   :  { %535 = vmatmul.mubr.bf16.vlgmr.msra.gmra.mxu1 %v199_v33 }
 0x1dd   :  { %v305_v37 = vpop.f32.mrf.mxu1 }
 0x1de   :  { %v306_v38 = vadd.f32 %v453_v36, %v305_v37 }
 0x1df   :  { %v536_v39 = vpop.f32.mrf.mxu1 }
 0x1e0   :  { %vm311_vm2 = vcmp.ge.f32.partialorder %v306_v38, 0.0  ;;  %v312_v40 = vmul.f32 0.01, %v306_v38 }
 0x1e1   :  { %v308_v41 = vpop.f32.mrf.mxu1 }
 0x1e2   :  { %v313_v42 = vsel %vm311_vm2, %v306_v38, %v312_v40 }
 0x1e3   :  { %v314_v43 = vpack.c.bf16 %v313_v42, %v313_v42  ;;  %v537_v44 = vpop.f32.mrf.mxu1 }
 0x1e5   :  { %555 = vmatmul.mubr.bf16.vlgmr.msra.gmra.mxu0 %v314_v43 }
 0x2a5   :  { %v420_v46 = vpop.f32.mrf.mxu0 }
 0x2a6   :  { %v421_v47 = vadd.f32 %v462_v45, %v420_v46 }
 0x2a7   :  { %v556_v48 = vpop.f32.mrf.mxu0 }
 0x2a8   :  { %426 = vst [vmem:[#allocation12] sm:$0xff] %v421_v47 }
 0x2a9   :  { %v423_v49 = vpop.f32.mrf.mxu0 }
 0x2aa   :  { %682 = shalt.err (!%p679_p10)
}
 0x2ab   :  { %436 = dma.vmem_to_hbm [thread:$0]  %s434_s27, 128, %s824_s8, [#allocation6]   ;;  %v557_v50 = vpop.f32.mrf.mxu0 }
 0x2ac   :  { %697 = dma.done.wait [#allocation6], 128  }
 0x2ad   :  { %698 = vsyncadd [#allocation6], 4294967168 }
 0x2ae   :  { %440 = vsyncpa [#allocation5], 1 }
 0x2af   :  { %441 = vsyncpa [#allocation8], 1 }
 0x2b0   :  { %442 = vsyncpa [#allocation11], 1 }
 0x2b1   :  { %443 = vsyncpa [#allocation6], 1 }

</bundles_post_ra>
